<compile_context>
chip_gen: v7x
topology: tpu7x:2x2x1
jax: 0.10.0
libtpu: 0.0.40
codegen_flags: <defaults>
</compile_context>

<pallas_src>
import functools

import jax
import jax.numpy as jnp
import numpy as np
from jax.experimental import pallas as pl
from jax.experimental.pallas import tpu as pltpu

EPSILON = 1e-07
NUM_CLASSES = 2

LANES = 128             # batch samples are laid out lane-dense
CHUNK_ROWS = 64         # rows per inner compute step (64 * 128 = 8192 samples)
ROW_MULT = 64           # block_rows granularity: covers bf16 (16,128) tiles,
                        # int8 (32,128) tiles and the CHUNK_ROWS inner loop
MAX_BLOCK_ROWS = 16384  # ~6 MiB of inputs per grid step (bf16 + int8 blocks)
VMEM_LIMIT_BYTES = 32 * 1024 * 1024


def _cdiv(a, b):
    return -(-a // b)


def _round_up(x, m):
    return ((x + m - 1) // m) * m


def _rowsum8(x):
    """(R, 128) -> (8, 128): sum groups of 8 sublanes via vreg-aligned slices."""
    acc = x[0:8, :]
    for r in range(8, x.shape[0], 8):
        acc = acc + x[r:r + 8, :]
    return acc


def _f1_partial_kernel(diff_ref, lab_ref, part_ref):
    """Accumulate per-(sublane, lane) partial sums over the batch stream.

    diff_ref : (block_rows, 128) bf16   0.5 * (logit[:, 1] - logit[:, 0])
    lab_ref  : (block_rows, 128) int8   labels in {0, 1} (0 for padding)
    part_ref : (3, 8, 128) f32 resident output block (one per 'core' index)
               [0] sum tanh(d/2), [1] sum tanh(d/2) * y, [2] sum y
    Zero-padded samples (diff == 0, label == 0) contribute exactly 0 to every
    accumulated row, so no masking is needed in the hot loop.
    """
    b = pl.program_id(1)

    @pl.when(b == 0)
    def _init():
        part_ref[...] = jnp.zeros_like(part_ref)

    n_chunks = diff_ref.shape[0] // CHUNK_ROWS

    def body(i, carry):
        s_t, s_ty, s_y = carry
        r0 = pl.multiple_of(i * CHUNK_ROWS, CHUNK_ROWS)
        t = jnp.tanh(diff_ref[pl.ds(r0, CHUNK_ROWS), :].astype(jnp.float32))
        y = lab_ref[pl.ds(r0, CHUNK_ROWS), :].astype(jnp.float32)
        return (s_t + _rowsum8(t),
                s_ty + _rowsum8(t * y),
                s_y + _rowsum8(y))

    zero = jnp.zeros((8, LANES), jnp.float32)
    s_t, s_ty, s_y = jax.lax.fori_loop(0, n_chunks, body, (zero, zero, zero))

    # Full-vreg (unmasked) read-modify-writes on the resident output block.
    part_ref[0] += s_t
    part_ref[1] += s_ty
    part_ref[2] += s_y


def f1_loss(y_pred, y_true, *, num_cores=1, max_block_rows=MAX_BLOCK_ROWS):
    """Soft two-class F1 loss (1 - mean F1), matching the PyTorch F1_Loss.

    y_pred: (N, 2) float logits; y_true: (N,) int labels in {0, 1}.
    num_cores: leave at 1 on v5e/v6e; set to 2 on v7x so both TensorCores
      drive their own HBM stream (CORE_PARALLEL on the leading grid axis).
    """
    assert y_pred.ndim == 2 and y_pred.shape[1] == NUM_CLASSES
    assert y_true.ndim == 1 and y_true.shape[0] == y_pred.shape[0]
    n = y_pred.shape[0]

    # ---- layout plumbing: one small producer fusion per stream -------------
    # The only HBM arrays the kernel reads are a bf16 half-logit-diff
    # (2 B/sample) and an int8 label (1 B/sample).
    z0 = y_pred[:, 0].astype(jnp.float32)
    z1 = y_pred[:, 1].astype(jnp.float32)
    half_diff = (0.5 * (z1 - z0)).astype(jnp.bfloat16)            # (N,)
    labels = y_true.astype(jnp.int8)                              # (N,)

    rows = _cdiv(n, LANES)
    rows_per_core = _cdiv(rows, num_cores)
    cap = max(ROW_MULT, (max_block_rows // ROW_MULT) * ROW_MULT)
    block_rows = min(cap, _round_up(rows_per_core, ROW_MULT))
    blocks_per_core = _cdiv(rows_per_core, block_rows)
    r_total = num_cores * blocks_per_core * block_rows
    total = r_total * LANES

    # Zero padding (fused into the producer fusions): padded samples have
    # diff == 0 and label == 0, contributing exactly 0 to all three sums.
    diff2d = jnp.pad(half_diff, (0, total - n)).reshape(r_total, LANES)
    lab2d = jnp.pad(labels, (0, total - n)).reshape(r_total, LANES)

    if num_cores > 1:
        dim_sem = (pltpu.CORE_PARALLEL, pltpu.ARBITRARY)
    else:
        dim_sem = ("arbitrary", "arbitrary")

    parts = pl.pallas_call(
        _f1_partial_kernel,
        out_shape=jax.ShapeDtypeStruct((num_cores, 3, 8, LANES), jnp.float32),
        grid_spec=pltpu.PrefetchScalarGridSpec(
            num_scalar_prefetch=0,
            grid=(num_cores, blocks_per_core),
            in_specs=[
                pl.BlockSpec((block_rows, LANES),
                             lambda c, b: (c * blocks_per_core + b, 0)),
                pl.BlockSpec((block_rows, LANES),
                             lambda c, b: (c * blocks_per_core + b, 0)),
            ],
            out_specs=pl.BlockSpec((None, 3, 8, LANES),
                                   lambda c, b: (c, 0, 0, 0)),
        ),
        compiler_params=pltpu.CompilerParams(
            dimension_semantics=dim_sem,
            vmem_limit_bytes=VMEM_LIMIT_BYTES),
    )(diff2d, lab2d)

    # ---- tiny scalar epilogue ----------------------------------------------
    # p1 = softmax(y_pred)[:, 1] = sigmoid(z1 - z0) = 0.5 * tanh((z1-z0)/2) + 0.5
    sums = jnp.sum(parts, axis=(0, 2, 3))                         # (3,)
    s_t, s_ty, s_y = sums[0], sums[1], sums[2]
    n_f = jnp.float32(n)
    sum_p1 = 0.5 * s_t + 0.5 * n_f        # sum of p1 over the valid samples
    tp1 = 0.5 * s_ty + 0.5 * s_y          # sum of p1 * y
    cnt1 = s_y                            # number of positive labels

    tp = jnp.stack([n_f - cnt1 - sum_p1 + tp1, tp1])              # class 0, 1
    fp = jnp.stack([cnt1 - tp1, sum_p1 - tp1])
    fn = jnp.stack([sum_p1 - tp1, cnt1 - tp1])
    precision = tp / (tp + fp + EPSILON)
    recall = tp / (tp + fn + EPSILON)
    f1 = 2.0 * precision * recall / (precision + recall + EPSILON)
    f1 = jnp.clip(f1, EPSILON, 1.0 - EPSILON)
    return 1.0 - jnp.mean(f1)


def _f1_loss_ref(y_pred, y_true):
    """Pure-JAX reference mirroring the PyTorch module."""
    y_oh = jax.nn.one_hot(y_true, NUM_CLASSES, dtype=jnp.float32)
    p = jax.nn.softmax(y_pred.astype(jnp.float32), axis=1)
    tp = jnp.sum(y_oh * p, axis=0)
    fp = jnp.sum((1.0 - y_oh) * p, axis=0)
    fn = jnp.sum(y_oh * (1.0 - p), axis=0)
    precision = tp / (tp + fp + EPSILON)
    recall = tp / (tp + fn + EPSILON)
    f1 = 2.0 * (precision * recall) / (precision + recall + EPSILON)
    f1 = jnp.clip(f1, EPSILON, 1.0 - EPSILON)
    return 1.0 - jnp.mean(f1)


if __name__ == "__main__":
    key = jax.random.PRNGKey(0)
    k1, k2, k3, k4 = jax.random.split(key, 4)

    # Small, ragged batch: exercises lane/sublane zero-padding.
    n1 = 300
    yp1 = jax.random.normal(k1, (n1, NUM_CLASSES), dtype=jnp.float32)
    yt1 = jax.random.randint(k2, (n1,), 0, NUM_CLASSES, dtype=jnp.int32)
    loss1 = jax.jit(f1_loss)(yp1, yt1)
    jax.block_until_ready(loss1)
    np.testing.assert_allclose(np.asarray(loss1),
                               np.asarray(_f1_loss_ref(yp1, yt1)),
                               rtol=2e-3, atol=1e-3)

    # Larger batch with a small block cap: exercises both the multi-chunk
    # inner loop and the multi-step accumulation over the grid reduction axis.
    n2 = 20000
    yp2 = 2.0 * jax.random.normal(k3, (n2, NUM_CLASSES), dtype=jnp.float32)
    yt2 = jax.random.randint(k4, (n2,), 0, NUM_CLASSES, dtype=jnp.int32)
    loss2 = jax.jit(functools.partial(f1_loss, max_block_rows=128))(yp2, yt2)
    jax.block_until_ready(loss2)
    np.testing.assert_allclose(np.asarray(loss2),
                               np.asarray(_f1_loss_ref(yp2, yt2)),
                               rtol=2e-3, atol=1e-3)

    print("KERNEL_OK")
</pallas_src>

<mosaic_0001>
module attributes {stable_mosaic.version = 11 : i64} {
  func.func @_f1_partial_kernel(%arg0: i32, %arg1: i32, %arg2: memref<64x128xbf16, #tpu.memory_space<vmem>>, %arg3: memref<64x128xi8, #tpu.memory_space<vmem>>, %arg4: memref<1x3x8x128xf32, #tpu.memory_space<vmem>>) attributes {dimension_semantics = [#tpu.dimension_semantics<arbitrary>, #tpu.dimension_semantics<arbitrary>], iteration_bounds = array<i64: 1, 1>, scalar_prefetch = 0 : i64, scratch_operands = 0 : i64, tpu.core_type = #tpu.core_type<tc>, window_params = [{transform_indices = @transform_0, window_bounds = array<i64: 64, 128>}, {transform_indices = @transform_1, window_bounds = array<i64: 64, 128>}, {transform_indices = @transform_2, window_bounds = array<i64: 1, 3, 8, 128>}]} {
    %c0_i32 = arith.constant 0 : i32
    %0 = arith.cmpi eq, %arg1, %c0_i32 : i32
    %1 = arith.extui %0 : i1 to i32
    %c0_i32_0 = arith.constant 0 : i32
    %2 = arith.cmpi ne, %1, %c0_i32_0 : i32
    scf.if %2 {
      %cst_25 = arith.constant 0.000000e+00 : f32
      %80 = vector.broadcast %cst_25 : f32 to vector<3x8x128xf32>
      %c0_26 = arith.constant 0 : index
      %c0_27 = arith.constant 0 : index
      %c0_28 = arith.constant 0 : index
      %c0_29 = arith.constant 0 : index
      %81 = vector.load %arg4[%c0_26, %c0_27, %c0_28, %c0_29] : memref<1x3x8x128xf32, #tpu.memory_space<vmem>>, vector<1x3x8x128xf32>
      %82 = vector.shape_cast %81 : vector<1x3x8x128xf32> to vector<3x8x128xf32>
      %83 = vector.shape_cast %80 : vector<3x8x128xf32> to vector<1x3x8x128xf32>
      tpu.vector_store %arg4[%c0_26, %c0_27, %c0_28, %c0_29], %83 {strides = array<i32>} : memref<1x3x8x128xf32, #tpu.memory_space<vmem>>, vector<1x3x8x128xf32>,
    } else {
    }
    %cst = arith.constant 0.000000e+00 : f32
    %3 = vector.broadcast %cst : f32 to vector<8x128xf32>
    %c0_i32_1 = arith.constant 0 : i32
    %c64_i32 = arith.constant 64 : i32
    %4 = arith.muli %c0_i32_1, %c64_i32 : i32
    %5 = tpu.assume_multiple %4, 64 : i32
    %6 = arith.index_cast %5 : i32 to index
    %c0 = arith.constant 0 : index
    %7 = vector.load %arg2[%6, %c0] : memref<64x128xbf16, #tpu.memory_space<vmem>>, vector<64x128xbf16>
    %8 = arith.extf %7 : vector<64x128xbf16> to vector<64x128xf32>
    %9 = math.tanh %8 : vector<64x128xf32>
    %10 = arith.index_cast %5 : i32 to index
    %c0_2 = arith.constant 0 : index
    %11 = vector.load %arg3[%10, %c0_2] : memref<64x128xi8, #tpu.memory_space<vmem>>, vector<64x128xi8>
    %12 = arith.sitofp %11 : vector<64x128xi8> to vector<64x128xf32>
    %13 = vector.extract_strided_slice %9 {offsets = [0, 0], sizes = [8, 128], strides = [1, 1]} : vector<64x128xf32> to vector<8x128xf32>
    %14 = vector.extract_strided_slice %9 {offsets = [8, 0], sizes = [8, 128], strides = [1, 1]} : vector<64x128xf32> to vector<8x128xf32>
    %15 = arith.addf %13, %14 : vector<8x128xf32>
    %16 = vector.extract_strided_slice %9 {offsets = [16, 0], sizes = [8, 128], strides = [1, 1]} : vector<64x128xf32> to vector<8x128xf32>
    %17 = arith.addf %15, %16 : vector<8x128xf32>
    %18 = vector.extract_strided_slice %9 {offsets = [24, 0], sizes = [8, 128], strides = [1, 1]} : vector<64x128xf32> to vector<8x128xf32>
    %19 = arith.addf %17, %18 : vector<8x128xf32>
    %20 = vector.extract_strided_slice %9 {offsets = [32, 0], sizes = [8, 128], strides = [1, 1]} : vector<64x128xf32> to vector<8x128xf32>
    %21 = arith.addf %19, %20 : vector<8x128xf32>
    %22 = vector.extract_strided_slice %9 {offsets = [40, 0], sizes = [8, 128], strides = [1, 1]} : vector<64x128xf32> to vector<8x128xf32>
    %23 = arith.addf %21, %22 : vector<8x128xf32>
    %24 = vector.extract_strided_slice %9 {offsets = [48, 0], sizes = [8, 128], strides = [1, 1]} : vector<64x128xf32> to vector<8x128xf32>
    %25 = arith.addf %23, %24 : vector<8x128xf32>
    %26 = vector.extract_strided_slice %9 {offsets = [56, 0], sizes = [8, 128], strides = [1, 1]} : vector<64x128xf32> to vector<8x128xf32>
    %27 = arith.addf %25, %26 : vector<8x128xf32>
    %28 = arith.addf %3, %27 : vector<8x128xf32>
    %29 = arith.mulf %9, %12 : vector<64x128xf32>
    %30 = vector.extract_strided_slice %29 {offsets = [0, 0], sizes = [8, 128], strides = [1, 1]} : vector<64x128xf32> to vector<8x128xf32>
    %31 = vector.extract_strided_slice %29 {offsets = [8, 0], sizes = [8, 128], strides = [1, 1]} : vector<64x128xf32> to vector<8x128xf32>
    %32 = arith.addf %30, %31 : vector<8x128xf32>
    %33 = vector.extract_strided_slice %29 {offsets = [16, 0], sizes = [8, 128], strides = [1, 1]} : vector<64x128xf32> to vector<8x128xf32>
    %34 = arith.addf %32, %33 : vector<8x128xf32>
    %35 = vector.extract_strided_slice %29 {offsets = [24, 0], sizes = [8, 128], strides = [1, 1]} : vector<64x128xf32> to vector<8x128xf32>
    %36 = arith.addf %34, %35 : vector<8x128xf32>
    %37 = vector.extract_strided_slice %29 {offsets = [32, 0], sizes = [8, 128], strides = [1, 1]} : vector<64x128xf32> to vector<8x128xf32>
    %38 = arith.addf %36, %37 : vector<8x128xf32>
    %39 = vector.extract_strided_slice %29 {offsets = [40, 0], sizes = [8, 128], strides = [1, 1]} : vector<64x128xf32> to vector<8x128xf32>
    %40 = arith.addf %38, %39 : vector<8x128xf32>
    %41 = vector.extract_strided_slice %29 {offsets = [48, 0], sizes = [8, 128], strides = [1, 1]} : vector<64x128xf32> to vector<8x128xf32>
    %42 = arith.addf %40, %41 : vector<8x128xf32>
    %43 = vector.extract_strided_slice %29 {offsets = [56, 0], sizes = [8, 128], strides = [1, 1]} : vector<64x128xf32> to vector<8x128xf32>
    %44 = arith.addf %42, %43 : vector<8x128xf32>
    %45 = arith.addf %3, %44 : vector<8x128xf32>
    %46 = vector.extract_strided_slice %12 {offsets = [0, 0], sizes = [8, 128], strides = [1, 1]} : vector<64x128xf32> to vector<8x128xf32>
    %47 = vector.extract_strided_slice %12 {offsets = [8, 0], sizes = [8, 128], strides = [1, 1]} : vector<64x128xf32> to vector<8x128xf32>
    %48 = arith.addf %46, %47 : vector<8x128xf32>
    %49 = vector.extract_strided_slice %12 {offsets = [16, 0], sizes = [8, 128], strides = [1, 1]} : vector<64x128xf32> to vector<8x128xf32>
    %50 = arith.addf %48, %49 : vector<8x128xf32>
    %51 = vector.extract_strided_slice %12 {offsets = [24, 0], sizes = [8, 128], strides = [1, 1]} : vector<64x128xf32> to vector<8x128xf32>
    %52 = arith.addf %50, %51 : vector<8x128xf32>
    %53 = vector.extract_strided_slice %12 {offsets = [32, 0], sizes = [8, 128], strides = [1, 1]} : vector<64x128xf32> to vector<8x128xf32>
    %54 = arith.addf %52, %53 : vector<8x128xf32>
    %55 = vector.extract_strided_slice %12 {offsets = [40, 0], sizes = [8, 128], strides = [1, 1]} : vector<64x128xf32> to vector<8x128xf32>
    %56 = arith.addf %54, %55 : vector<8x128xf32>
    %57 = vector.extract_strided_slice %12 {offsets = [48, 0], sizes = [8, 128], strides = [1, 1]} : vector<64x128xf32> to vector<8x128xf32>
    %58 = arith.addf %56, %57 : vector<8x128xf32>
    %59 = vector.extract_strided_slice %12 {offsets = [56, 0], sizes = [8, 128], strides = [1, 1]} : vector<64x128xf32> to vector<8x128xf32>
    %60 = arith.addf %58, %59 : vector<8x128xf32>
    %61 = arith.addf %3, %60 : vector<8x128xf32>
    %c1_i32 = arith.constant 1 : i32
    %c0_3 = arith.constant 0 : index
    %c0_4 = arith.constant 0 : index
    %c0_5 = arith.constant 0 : index
    %c0_6 = arith.constant 0 : index
    %62 = vector.load %arg4[%c0_3, %c0_4, %c0_5, %c0_6] : memref<1x3x8x128xf32, #tpu.memory_space<vmem>>, vector<1x1x8x128xf32>
    %63 = vector.shape_cast %62 : vector<1x1x8x128xf32> to vector<8x128xf32>
    %64 = arith.addf %63, %28 : vector<8x128xf32>
    %c0_7 = arith.constant 0 : index
    %c0_8 = arith.constant 0 : index
    %c0_9 = arith.constant 0 : index
    %c0_10 = arith.constant 0 : index
    %65 = vector.load %arg4[%c0_7, %c0_8, %c0_9, %c0_10] : memref<1x3x8x128xf32, #tpu.memory_space<vmem>>, vector<1x1x8x128xf32>
    %66 = vector.shape_cast %65 : vector<1x1x8x128xf32> to vector<8x128xf32>
    %67 = vector.shape_cast %64 : vector<8x128xf32> to vector<1x1x8x128xf32>
    tpu.vector_store %arg4[%c0_7, %c0_8, %c0_9, %c0_10], %67 {strides = array<i32>} : memref<1x3x8x128xf32, #tpu.memory_space<vmem>>, vector<1x1x8x128xf32>,
    %c0_11 = arith.constant 0 : index
    %c1 = arith.constant 1 : index
    %c0_12 = arith.constant 0 : index
    %c0_13 = arith.constant 0 : index
    %68 = vector.load %arg4[%c0_11, %c1, %c0_12, %c0_13] : memref<1x3x8x128xf32, #tpu.memory_space<vmem>>, vector<1x1x8x128xf32>
    %69 = vector.shape_cast %68 : vector<1x1x8x128xf32> to vector<8x128xf32>
    %70 = arith.addf %69, %45 : vector<8x128xf32>
    %c0_14 = arith.constant 0 : index
    %c1_15 = arith.constant 1 : index
    %c0_16 = arith.constant 0 : index
    %c0_17 = arith.constant 0 : index
    %71 = vector.load %arg4[%c0_14, %c1_15, %c0_16, %c0_17] : memref<1x3x8x128xf32, #tpu.memory_space<vmem>>, vector<1x1x8x128xf32>
    %72 = vector.shape_cast %71 : vector<1x1x8x128xf32> to vector<8x128xf32>
    %73 = vector.shape_cast %70 : vector<8x128xf32> to vector<1x1x8x128xf32>
    tpu.vector_store %arg4[%c0_14, %c1_15, %c0_16, %c0_17], %73 {strides = array<i32>} : memref<1x3x8x128xf32, #tpu.memory_space<vmem>>, vector<1x1x8x128xf32>,
    %c0_18 = arith.constant 0 : index
    %c2 = arith.constant 2 : index
    %c0_19 = arith.constant 0 : index
    %c0_20 = arith.constant 0 : index
    %74 = vector.load %arg4[%c0_18, %c2, %c0_19, %c0_20] : memref<1x3x8x128xf32, #tpu.memory_space<vmem>>, vector<1x1x8x128xf32>
    %75 = vector.shape_cast %74 : vector<1x1x8x128xf32> to vector<8x128xf32>
    %76 = arith.addf %75, %61 : vector<8x128xf32>
    %c0_21 = arith.constant 0 : index
    %c2_22 = arith.constant 2 : index
    %c0_23 = arith.constant 0 : index
    %c0_24 = arith.constant 0 : index
    %77 = vector.load %arg4[%c0_21, %c2_22, %c0_23, %c0_24] : memref<1x3x8x128xf32, #tpu.memory_space<vmem>>, vector<1x1x8x128xf32>
    %78 = vector.shape_cast %77 : vector<1x1x8x128xf32> to vector<8x128xf32>
    %79 = vector.shape_cast %76 : vector<8x128xf32> to vector<1x1x8x128xf32>
    tpu.vector_store %arg4[%c0_21, %c2_22, %c0_23, %c0_24], %79 {strides = array<i32>} : memref<1x3x8x128xf32, #tpu.memory_space<vmem>>, vector<1x1x8x128xf32>,
    return
  }
  func.func @transform_0(%arg0: i32, %arg1: i32) -> (i32, i32) {
    %c1_i32 = arith.constant 1 : i32
    %0 = arith.muli %arg0, %c1_i32 : i32
    %1 = arith.addi %0, %arg1 : i32
    %c0_i32 = arith.constant 0 : i32
    %c0_i32_0 = arith.constant 0 : i32
    return %1, %c0_i32 : i32, i32
  }
  func.func @transform_1(%arg0: i32, %arg1: i32) -> (i32, i32) {
    %c1_i32 = arith.constant 1 : i32
    %0 = arith.muli %arg0, %c1_i32 : i32
    %1 = arith.addi %0, %arg1 : i32
    %c0_i32 = arith.constant 0 : i32
    %c0_i32_0 = arith.constant 0 : i32
    return %1, %c0_i32 : i32, i32
  }
  func.func @transform_2(%arg0: i32, %arg1: i32) -> (i32, i32, i32, i32) {
    %c0_i32 = arith.constant 0 : i32
    %c0_i32_0 = arith.constant 0 : i32
    %c0_i32_1 = arith.constant 0 : i32
    %c0_i32_2 = arith.constant 0 : i32
    return %arg0, %c0_i32, %c0_i32_0, %c0_i32_1 : i32, i32, i32, i32
  }
}

</mosaic_0001>

<bundles_post_ra>
// kernel: f1_loss.1
= control target key start
LH: loop header
LB: loop body
LE: loop exit
PB: predicated region body
PF: predicated region fallthrough
CT: control target
= control target key end

     0   :  { %s245_s0 = inlined_call_operand.vmem [shape: bf16[64,128], index: 0, kind: input, shape index: {}]   ;;  %s246_s1 = inlined_call_operand.vmem [shape: s8[64,128], index: 1, kind: input, shape index: {}]   ;;  %s247_s2 = inlined_call_operand.vmem [shape: f32[1,3,8,128], index: 2, kind: output, shape index: {}]  }
   0x1   :  { %v168_v0 = vld [vmem:[%s245_s0] sm:$0xff]   ;;  %v183_v1 = vld [vmem:[%s245_s0 + $0x8] sm:$0xff]   ;;  %v184_v2 = vld [vmem:[%s245_s0 + $0x10] sm:$0xff]  }
   0x2   :  { %v169_v3 = vunpack.c.l.bf16 %v168_v0  ;;  %v170_v4 = vunpack.c.h.bf16 %v168_v0  ;;  %v173_v5 = vunpack.c.l.bf16 %v183_v1  ;;  %v86_v6 = vld [vmem:[%s246_s1] sm:$0xff]  ;;  %v174_v7 = vunpack.c.h.bf16 %v183_v1  ;;  %v185_v8 = vld [vmem:[%s245_s0 + $0x18] sm:$0xff]   ;;  %v87_v15 = vld [vmem:[%s246_s1 + $0x8] sm:$0xff] }
   0x3   :  { %v177_v9 = vunpack.c.l.bf16 %v184_v2  ;;  %v88_v10 = vunpack.c.0.s8 %v86_v6  ;;  %v89_v11 = vunpack.c.1.s8 %v86_v6  ;;  %v178_v12 = vunpack.c.h.bf16 %v184_v2 }
   0x4   :  { %187 = vtanh.f32 %v169_v3  ;;  %v90_v13 = vunpack.c.2.s8 %v86_v6  ;;  %v181_v14 = vunpack.c.l.bf16 %v185_v8  ;;  %v91_v16 = vunpack.c.3.s8 %v86_v6 }
   0x5   :  { %189 = vtanh.f32 %v170_v4  ;;  %v96_v17 = vcvt.s32.f32 %v88_v10  ;;  %v97_v18 = vcvt.s32.f32 %v89_v11  ;;  %v182_v19 = vunpack.c.h.bf16 %v185_v8 }
   0x6   :  { %191 = vtanh.f32 %v173_v5  ;;  %v92_v20 = vunpack.c.0.s8 %v87_v15  ;;  %v98_v21 = vcvt.s32.f32 %v90_v13  ;;  %v93_v23 = vunpack.c.1.s8 %v87_v15 }
   0x7   :  { %193 = vtanh.f32 %v174_v7  ;;  %v128_v22 = vadd.f32 %v97_v18, %v96_v17  ;;  %v99_v24 = vcvt.s32.f32 %v91_v16  ;;  %v94_v26 = vunpack.c.2.s8 %v87_v15 }
   0x8   :  { %195 = vtanh.f32 %v177_v9  ;;  %v100_v27 = vcvt.s32.f32 %v92_v20  ;;  %v95_v31 = vunpack.c.3.s8 %v87_v15  ;;  %v101_v32 = vcvt.s32.f32 %v93_v23 }
   0x9   :  { %197 = vtanh.f32 %v178_v12  ;;  %v129_v25 = vadd.f32 %v128_v22, %v98_v21  ;;  %v102_v39 = vcvt.s32.f32 %v94_v26 }
   0xa   :  { %199 = vtanh.f32 %v181_v14  ;;  %v103_v47 = vcvt.s32.f32 %v95_v31 }
   0xb   :  { %201 = vtanh.f32 %v182_v19  ;;  %v130_v28 = vadd.f32 %v129_v25, %v99_v24 }
   0xd   :  { %v131_v34 = vadd.f32 %v130_v28, %v100_v27 }
   0xe   :  { %v188_v29 = vpop.eup %187 }
   0xf   :  { %v190_v30 = vpop.eup %189  ;;  %v112_v33 = vmul.f32 %v188_v29, %v96_v17  ;;  %v132_v41 = vadd.f32 %v131_v34, %v101_v32 }
  0x10   :  { %v192_v35 = vpop.eup %191  ;;  %v104_v36 = vadd.f32 %v190_v30, %v188_v29  ;;  %v113_v37 = vmul.f32 %v190_v30, %v97_v18 }
  0x11   :  { %v194_v38 = vpop.eup %193  ;;  %v114_v40 = vmul.f32 %v192_v35, %v98_v21  ;;  %v133_v48 = vadd.f32 %v132_v41, %v102_v39 }
  0x12   :  { %v196_v42 = vpop.eup %195  ;;  %v105_v43 = vadd.f32 %v192_v35, %v104_v36  ;;  %v115_v44 = vmul.f32 %v194_v38, %v99_v24  ;;  %v120_v45 = vadd.f32 %v113_v37, %v112_v33 }
  0x13   :  { %v198_v46 = vpop.eup %197  ;;  %v116_v50 = vmul.f32 %v196_v42, %v100_v27  ;;  %v134_v53 = vadd.f32 %v133_v48, %v103_v47 }
  0x14   :  { %v106_v49 = vadd.f32 %v194_v38, %v105_v43  ;;  %v121_v51 = vadd.f32 %v120_v45, %v114_v40  ;;  %v200_v52 = vpop.eup %199  ;;  %v117_v55 = vmul.f32 %v198_v46, %v101_v32 }
  0x15   :  { %v202_v57 = vpop.eup %201  ;;  %v118_v59 = vmul.f32 %v200_v52, %v102_v39  ;;  %166 = vst [vmem:[%s247_s2 + $0x10] sm:$0xff] %v134_v53 }
  0x16   :  { %v107_v54 = vadd.f32 %v196_v42, %v106_v49  ;;  %v122_v56 = vadd.f32 %v121_v51, %v115_v44  ;;  %v119_v62 = vmul.f32 %v202_v57, %v103_v47 }
  0x18   :  { %v108_v58 = vadd.f32 %v198_v46, %v107_v54  ;;  %v123_v60 = vadd.f32 %v122_v56, %v116_v50 }
  0x1a   :  { %v109_v61 = vadd.f32 %v200_v52, %v108_v58  ;;  %v124_v63 = vadd.f32 %v123_v60, %v117_v55 }
  0x1c   :  { %v110_v0 = vadd.f32 %v202_v57, %v109_v61  ;;  %v125_v1 = vadd.f32 %v124_v63, %v118_v59 }
  0x1e   :  { %v126_v2 = vadd.f32 %v125_v1, %v119_v62  ;;  %138 = vst [vmem:[%s247_s2] sm:$0xff] %v110_v0 }
  0x20   :  { %164 = vst [vmem:[%s247_s2 + $0x8] sm:$0xff] %v126_v2 }

</bundles_post_ra>
